<compile_context>
chip_gen: v7x
topology: tpu7x:2x2x1
jax: 0.10.0
libtpu: 0.0.40
codegen_flags: <defaults>
</compile_context>

<pallas_src>
import jax
import jax.numpy as jnp
from jax.experimental import pallas as pl
from jax.experimental.pallas import tpu as pltpu


def _double_conv_kernel(x_ref, w1_ref, b1_ref, w2_ref, b2_ref, o_ref):
    """Fused (Conv3x3 pad1 + folded-BN + ReLU) x2 for one batch item.

    x_ref:  (1, H, W*Cin)        input, (W, C) flattened into lanes
    w1_ref: (W*Cin,  3*W*Cmid)   banded weights, ky-major blocks along N
    b1_ref: (1, W*Cmid)          folded BN bias (tiled across W)
    w2_ref: (W*Cmid, 3*W*Cout)
    b2_ref: (1, W*Cout)
    o_ref:  (1, H, W*Cout)       lane-dense output
    """
    H = x_ref.shape[1]
    WCmid = b1_ref.shape[1]
    WCout = b2_ref.shape[1]

    # Vertical-shift matrices (kernel constants, hoisted).  Combining the 3 ky
    # taps via the MXU avoids sublane-unaligned slices/concats of the results.
    r = jax.lax.broadcasted_iota(jnp.int32, (H, H), 0)
    c = jax.lax.broadcasted_iota(jnp.int32, (H, H), 1)
    shift_dn = (c == r - 1).astype(jnp.float32)  # row h <- row h-1, row 0 -> 0
    shift_up = (c == r + 1).astype(jnp.float32)  # row h <- row h+1, row H-1 -> 0

    def conv_bn_relu(x, w_ref, b_ref, n):
        # One big matmul covers all horizontal taps + channel contraction.
        t = jnp.dot(x, w_ref[...], preferred_element_type=jnp.float32)  # (H, 3n)
        t0 = t[:, 0:n]          # ky=0 tap: output row h uses t0[h-1]
        t1 = t[:, n:2 * n]      # ky=1 tap: output row h uses t1[h]
        t2 = t[:, 2 * n:3 * n]  # ky=2 tap: output row h uses t2[h+1]
        acc = (t1
               + jnp.dot(shift_dn, t0, preferred_element_type=jnp.float32)
               + jnp.dot(shift_up, t2, preferred_element_type=jnp.float32))
        return jnp.maximum(acc + b_ref[...], 0.0)                # bias + ReLU

    x = x_ref[0]                                     # (H, W*Cin), f32
    h1 = conv_bn_relu(x, w1_ref, b1_ref, WCmid)      # mid activation stays in VMEM
    y = conv_bn_relu(h1, w2_ref, b2_ref, WCout)
    o_ref[0] = y.astype(o_ref.dtype)


def _banded_weight(w_oihw, W):
    """Build the (W*Cin, 3*W*Cout) banded matrix for a 3x3 conv, padding=1.

    w_oihw: (Cout, Cin, 3, 3) PyTorch-layout weights (BN scale already folded).
    Column block ky*(W*Cout) + wo*Cout + co, row wi*Cin + ci holds
    w[co, ci, ky, kx] with kx = wi - wo + 1 (zero if out of band -> W padding).
    """
    Cout, Cin = w_oihw.shape[0], w_oihw.shape[1]
    wi = jnp.arange(W)
    wo = jnp.arange(W)
    kx = jnp.arange(3)
    # S[kx, wi, wo] = 1 iff wi == wo + kx - 1
    S = (wi[None, :, None] == (wo[None, None, :] + kx[:, None, None] - 1))
    S = S.astype(jnp.float32)
    # B[ky, wi, ci, wo, co]
    B = jnp.einsum("xiw,ocyx->yicwo", S, w_oihw)
    # -> rows (wi, ci), cols (ky, wo, co)
    return jnp.transpose(B, (1, 2, 0, 3, 4)).reshape(W * Cin, 3 * W * Cout)


def make_double_conv_params(key, in_channels, out_channels, W, mid_channels=None):
    if not mid_channels:
        mid_channels = out_channels
    eps = 1e-5
    ks = jax.random.split(key, 10)

    def conv_w(k, cin, cout):
        # PyTorch layout (cout, cin, 3, 3)
        return 0.1 * jax.random.normal(k, (cout, cin, 3, 3), jnp.float32)

    def bn_params(kg, kb, km, kv, c):
        gamma = 1.0 + 0.1 * jax.random.normal(kg, (c,), jnp.float32)
        beta = 0.1 * jax.random.normal(kb, (c,), jnp.float32)
        mean = 0.1 * jax.random.normal(km, (c,), jnp.float32)
        var = jnp.abs(jax.random.normal(kv, (c,), jnp.float32)) + 0.5
        scale = gamma / jnp.sqrt(var + eps)
        bias = beta - mean * scale
        return scale, bias

    w1_pt = conv_w(ks[0], in_channels, mid_channels)
    s1, b1 = bn_params(ks[1], ks[2], ks[3], ks[4], mid_channels)
    w2_pt = conv_w(ks[5], mid_channels, out_channels)
    s2, b2 = bn_params(ks[6], ks[7], ks[8], ks[9], out_channels)

    # Fold BN scale into conv weights; pre-expand to banded matmul form.
    w1_band = _banded_weight(w1_pt * s1[:, None, None, None], W)
    w2_band = _banded_weight(w2_pt * s2[:, None, None, None], W)
    b1_flat = jnp.tile(b1, W).reshape(1, W * mid_channels)
    b2_flat = jnp.tile(b2, W).reshape(1, W * out_channels)

    return dict(
        w1=w1_band, b1=b1_flat, w2=w2_band, b2=b2_flat,
        # Original-layout params kept only for the reference implementation.
        w1_pt=w1_pt, s1=s1, b1_vec=b1, w2_pt=w2_pt, s2=s2, b2_vec=b2,
        mid_channels=mid_channels, out_channels=out_channels,
    )


def double_conv(x_nchw, params):
    """Forward pass matching DoubleConv(in, out): NCHW in -> NCHW out."""
    N, Cin, H, W = x_nchw.shape
    WCin = W * Cin
    WCmid = params["b1"].shape[1]
    WCout = params["b2"].shape[1]
    Cout = WCout // W

    # NCHW -> NHWC -> flatten (W, C) into the lane axis (contiguous, free).
    x = jnp.transpose(x_nchw, (0, 2, 3, 1)).reshape(N, H, WCin)

    y = pl.pallas_call(
        _double_conv_kernel,
        out_shape=jax.ShapeDtypeStruct((N, H, WCout), jnp.float32),
        grid_spec=pltpu.PrefetchScalarGridSpec(
            num_scalar_prefetch=0,
            grid=(N,),
            in_specs=[
                pl.BlockSpec((1, H, WCin), lambda n: (n, 0, 0)),
                pl.BlockSpec((WCin, 3 * WCmid), lambda n: (0, 0)),
                pl.BlockSpec((1, WCmid), lambda n: (0, 0)),
                pl.BlockSpec((WCmid, 3 * WCout), lambda n: (0, 0)),
                pl.BlockSpec((1, WCout), lambda n: (0, 0)),
            ],
            out_specs=pl.BlockSpec((1, H, WCout), lambda n: (n, 0, 0)),
        ),
        compiler_params=pltpu.CompilerParams(
            dimension_semantics=("parallel",)),
    )(x, params["w1"], params["b1"], params["w2"], params["b2"])

    # (N, H, W*Cout) -> (N, H, W, Cout) -> NCHW
    return jnp.transpose(y.reshape(N, H, W, Cout), (0, 3, 1, 2))


def _reference(x_nchw, params):
    """Plain-JAX reference (lax.conv) for correctness checking."""
    def step(x, w_pt, scale, bias):
        y = jax.lax.conv_general_dilated(
            x, w_pt, window_strides=(1, 1), padding="SAME",
            dimension_numbers=("NCHW", "OIHW", "NCHW"))
        y = y * scale[None, :, None, None] + bias[None, :, None, None]
        return jnp.maximum(y, 0.0)
    y = step(x_nchw, params["w1_pt"], params["s1"], params["b1_vec"])
    return step(y, params["w2_pt"], params["s2"], params["b2_vec"])


if __name__ == "__main__":
    key = jax.random.PRNGKey(0)
    kx, kp = jax.random.split(key)

    N, Cin, H, W = 2, 4, 16, 16
    Cout = 8
    x = jax.random.normal(kx, (N, Cin, H, W), jnp.float32)
    params = make_double_conv_params(kp, Cin, Cout, W)

    out = jax.block_until_ready(double_conv(x, params))
    ref = jax.block_until_ready(_reference(x, params))

    assert out.shape == (N, Cout, H, W), out.shape
    assert jnp.allclose(out, ref, atol=1e-4, rtol=1e-4), \
        float(jnp.max(jnp.abs(out - ref)))
    print("KERNEL_OK")
</pallas_src>

<mosaic_0001>
module attributes {stable_mosaic.version = 11 : i64} {
  func.func @_double_conv_kernel(%arg0: i32, %arg1: memref<1x16x64xf32, #tpu.memory_space<vmem>>, %arg2: memref<64x384xf32, #tpu.memory_space<vmem>>, %arg3: memref<1x128xf32, #tpu.memory_space<vmem>>, %arg4: memref<128x384xf32, #tpu.memory_space<vmem>>, %arg5: memref<1x128xf32, #tpu.memory_space<vmem>>, %arg6: memref<1x16x128xf32, #tpu.memory_space<vmem>>) attributes {dimension_semantics = [#tpu.dimension_semantics<parallel>], iteration_bounds = array<i64: 2>, scalar_prefetch = 0 : i64, scratch_operands = 0 : i64, tpu.core_type = #tpu.core_type<tc>, window_params = [{transform_indices = @transform_0, window_bounds = array<i64: 1, 16, 64>}, {pipeline_mode = #tpu.pipeline_mode<synchronous>, transform_indices = @transform_1, window_bounds = array<i64: 64, 384>}, {pipeline_mode = #tpu.pipeline_mode<synchronous>, transform_indices = @transform_2, window_bounds = array<i64: 1, 128>}, {pipeline_mode = #tpu.pipeline_mode<synchronous>, transform_indices = @transform_3, window_bounds = array<i64: 128, 384>}, {pipeline_mode = #tpu.pipeline_mode<synchronous>, transform_indices = @transform_4, window_bounds = array<i64: 1, 128>}, {transform_indices = @transform_5, window_bounds = array<i64: 1, 16, 128>}]} {
    %0 = tpu.iota {dimensions = array<i32: 0>} : vector<16x16xi32>
    %1 = tpu.iota {dimensions = array<i32: 1>} : vector<16x16xi32>
    %c1_i32 = arith.constant 1 : i32
    %2 = vector.broadcast %c1_i32 : i32 to vector<16x16xi32>
    %3 = arith.subi %0, %2 : vector<16x16xi32>
    %4 = arith.cmpi eq, %1, %3 : vector<16x16xi32>
    %5 = arith.extui %4 : vector<16x16xi1> to vector<16x16xi32>
    %6 = arith.sitofp %5 : vector<16x16xi32> to vector<16x16xf32>
    %c1_i32_0 = arith.constant 1 : i32
    %7 = vector.broadcast %c1_i32_0 : i32 to vector<16x16xi32>
    %8 = arith.addi %0, %7 : vector<16x16xi32>
    %9 = arith.cmpi eq, %1, %8 : vector<16x16xi32>
    %10 = arith.extui %9 : vector<16x16xi1> to vector<16x16xi32>
    %11 = arith.sitofp %10 : vector<16x16xi32> to vector<16x16xf32>
    %c0 = arith.constant 0 : index
    %c0_1 = arith.constant 0 : index
    %c0_2 = arith.constant 0 : index
    %12 = vector.load %arg1[%c0, %c0_1, %c0_2] : memref<1x16x64xf32, #tpu.memory_space<vmem>>, vector<1x16x64xf32>
    %13 = vector.shape_cast %12 : vector<1x16x64xf32> to vector<16x64xf32>
    %c0_3 = arith.constant 0 : index
    %c0_4 = arith.constant 0 : index
    %14 = vector.load %arg2[%c0_3, %c0_4] : memref<64x384xf32, #tpu.memory_space<vmem>>, vector<64x384xf32>
    %cst = arith.constant dense<0.000000e+00> : vector<16x384xf32>
    %15 = tpu.matmul %13, %14, %cst {dimension_numbers = #tpu.dot_dimension_numbers<[1], [0], [0], [1], [0, 0, 1, 1], [], []>} : vector<16x64xf32>, vector<64x384xf32>, vector<16x384xf32> -> vector<16x384xf32>
    %16 = vector.extract_strided_slice %15 {offsets = [0, 0], sizes = [16, 128], strides = [1, 1]} : vector<16x384xf32> to vector<16x128xf32>
    %17 = vector.extract_strided_slice %15 {offsets = [0, 128], sizes = [16, 128], strides = [1, 1]} : vector<16x384xf32> to vector<16x128xf32>
    %18 = vector.extract_strided_slice %15 {offsets = [0, 256], sizes = [16, 128], strides = [1, 1]} : vector<16x384xf32> to vector<16x128xf32>
    %cst_5 = arith.constant dense<0.000000e+00> : vector<16x128xf32>
    %19 = tpu.matmul %6, %16, %cst_5 {dimension_numbers = #tpu.dot_dimension_numbers<[1], [0], [0], [1], [0, 0, 1, 1], [], []>} : vector<16x16xf32>, vector<16x128xf32>, vector<16x128xf32> -> vector<16x128xf32>
    %20 = arith.addf %17, %19 : vector<16x128xf32>
    %cst_6 = arith.constant dense<0.000000e+00> : vector<16x128xf32>
    %21 = tpu.matmul %11, %18, %cst_6 {dimension_numbers = #tpu.dot_dimension_numbers<[1], [0], [0], [1], [0, 0, 1, 1], [], []>} : vector<16x16xf32>, vector<16x128xf32>, vector<16x128xf32> -> vector<16x128xf32>
    %22 = arith.addf %20, %21 : vector<16x128xf32>
    %c0_7 = arith.constant 0 : index
    %c0_8 = arith.constant 0 : index
    %23 = vector.load %arg3[%c0_7, %c0_8] : memref<1x128xf32, #tpu.memory_space<vmem>>, vector<1x128xf32>
    %24 = vector.broadcast %23 : vector<1x128xf32> to vector<16x128xf32>
    %25 = arith.addf %22, %24 : vector<16x128xf32>
    %cst_9 = arith.constant 0.000000e+00 : f32
    %26 = vector.broadcast %cst_9 : f32 to vector<16x128xf32>
    %27 = arith.maximumf %25, %26 : vector<16x128xf32>
    %c0_10 = arith.constant 0 : index
    %c0_11 = arith.constant 0 : index
    %28 = vector.load %arg4[%c0_10, %c0_11] : memref<128x384xf32, #tpu.memory_space<vmem>>, vector<128x384xf32>
    %cst_12 = arith.constant dense<0.000000e+00> : vector<16x384xf32>
    %29 = tpu.matmul %27, %28, %cst_12 {dimension_numbers = #tpu.dot_dimension_numbers<[1], [0], [0], [1], [0, 0, 1, 1], [], []>} : vector<16x128xf32>, vector<128x384xf32>, vector<16x384xf32> -> vector<16x384xf32>
    %30 = vector.extract_strided_slice %29 {offsets = [0, 0], sizes = [16, 128], strides = [1, 1]} : vector<16x384xf32> to vector<16x128xf32>
    %31 = vector.extract_strided_slice %29 {offsets = [0, 128], sizes = [16, 128], strides = [1, 1]} : vector<16x384xf32> to vector<16x128xf32>
    %32 = vector.extract_strided_slice %29 {offsets = [0, 256], sizes = [16, 128], strides = [1, 1]} : vector<16x384xf32> to vector<16x128xf32>
    %cst_13 = arith.constant dense<0.000000e+00> : vector<16x128xf32>
    %33 = tpu.matmul %6, %30, %cst_13 {dimension_numbers = #tpu.dot_dimension_numbers<[1], [0], [0], [1], [0, 0, 1, 1], [], []>} : vector<16x16xf32>, vector<16x128xf32>, vector<16x128xf32> -> vector<16x128xf32>
    %34 = arith.addf %31, %33 : vector<16x128xf32>
    %cst_14 = arith.constant dense<0.000000e+00> : vector<16x128xf32>
    %35 = tpu.matmul %11, %32, %cst_14 {dimension_numbers = #tpu.dot_dimension_numbers<[1], [0], [0], [1], [0, 0, 1, 1], [], []>} : vector<16x16xf32>, vector<16x128xf32>, vector<16x128xf32> -> vector<16x128xf32>
    %36 = arith.addf %34, %35 : vector<16x128xf32>
    %c0_15 = arith.constant 0 : index
    %c0_16 = arith.constant 0 : index
    %37 = vector.load %arg5[%c0_15, %c0_16] : memref<1x128xf32, #tpu.memory_space<vmem>>, vector<1x128xf32>
    %38 = vector.broadcast %37 : vector<1x128xf32> to vector<16x128xf32>
    %39 = arith.addf %36, %38 : vector<16x128xf32>
    %cst_17 = arith.constant 0.000000e+00 : f32
    %40 = vector.broadcast %cst_17 : f32 to vector<16x128xf32>
    %41 = arith.maximumf %39, %40 : vector<16x128xf32>
    %c0_18 = arith.constant 0 : index
    %c0_19 = arith.constant 0 : index
    %c0_20 = arith.constant 0 : index
    %42 = vector.load %arg6[%c0_18, %c0_19, %c0_20] : memref<1x16x128xf32, #tpu.memory_space<vmem>>, vector<1x16x128xf32>
    %43 = vector.shape_cast %42 : vector<1x16x128xf32> to vector<16x128xf32>
    %44 = vector.shape_cast %41 : vector<16x128xf32> to vector<1x16x128xf32>
    tpu.vector_store %arg6[%c0_18, %c0_19, %c0_20], %44 {strides = array<i32>} : memref<1x16x128xf32, #tpu.memory_space<vmem>>, vector<1x16x128xf32>,
    return
  }
  func.func @transform_0(%arg0: i32) -> (i32, i32, i32) {
    %c0_i32 = arith.constant 0 : i32
    %c0_i32_0 = arith.constant 0 : i32
    %c0_i32_1 = arith.constant 0 : i32
    return %arg0, %c0_i32, %c0_i32_0 : i32, i32, i32
  }
  func.func @transform_1(%arg0: i32) -> (i32, i32) {
    %c0_i32 = arith.constant 0 : i32
    %c0_i32_0 = arith.constant 0 : i32
    %c0_i32_1 = arith.constant 0 : i32
    return %c0_i32, %c0_i32_0 : i32, i32
  }
  func.func @transform_2(%arg0: i32) -> (i32, i32) {
    %c0_i32 = arith.constant 0 : i32
    %c0_i32_0 = arith.constant 0 : i32
    %c0_i32_1 = arith.constant 0 : i32
    return %c0_i32, %c0_i32_0 : i32, i32
  }
  func.func @transform_3(%arg0: i32) -> (i32, i32) {
    %c0_i32 = arith.constant 0 : i32
    %c0_i32_0 = arith.constant 0 : i32
    %c0_i32_1 = arith.constant 0 : i32
    return %c0_i32, %c0_i32_0 : i32, i32
  }
  func.func @transform_4(%arg0: i32) -> (i32, i32) {
    %c0_i32 = arith.constant 0 : i32
    %c0_i32_0 = arith.constant 0 : i32
    %c0_i32_1 = arith.constant 0 : i32
    return %c0_i32, %c0_i32_0 : i32, i32
  }
  func.func @transform_5(%arg0: i32) -> (i32, i32, i32) {
    %c0_i32 = arith.constant 0 : i32
    %c0_i32_0 = arith.constant 0 : i32
    %c0_i32_1 = arith.constant 0 : i32
    return %arg0, %c0_i32, %c0_i32_0 : i32, i32, i32
  }
}

</mosaic_0001>

<bundles_post_ra>
// kernel: tpu_custom_call.1
= control target key start
LH: loop header
LB: loop body
LE: loop exit
PB: predicated region body
PF: predicated region fallthrough
CT: control target
= control target key end

     0   :  { %10 = vsyncpa [#allocation3], 0  ;;  %s1968_s0 = inlined_call_operand.hbm [shape: f32[2,16,64], index: 0, kind: input, shape index: {}]   ;;  %s1969_s1 = inlined_call_operand.hbm [shape: f32[64,384], index: 1, kind: input, shape index: {}]   ;;  %s1970_s2 = inlined_call_operand.vmem [shape: f32[1,128], index: 2, kind: input, shape index: {}]   ;;  %s1971_s3 = inlined_call_operand.hbm [shape: f32[128,384], index: 3, kind: input, shape index: {}]   ;;  %s1972_s4 = inlined_call_operand.vmem [shape: f32[1,128], index: 4, kind: input, shape index: {}]   ;;  %s1973_s5 = inlined_call_operand.hbm [shape: f32[2,16,128], index: 5, kind: output, shape index: {}]  }
   0x1   :  { %12 = vsyncpa [#allocation3 + $0x1], 0 }
   0x2   :  { %13 = vsyncpa [#allocation6], 0 }
   0x3   :  { %14 = vsyncpa [#allocation4], 0 }
   0x4   :  { %16 = vsyncpa [#allocation4 + $0x1], 0  ;;  %s1680_s18 = smov 0   ;;  %s1682_s19 = smov 0  }
   0x5   :  { %s1684_s20 = smov 0   ;;  %s1686_s21 = smov 0  }
   0x6 LB: > { %s1701_s22 = sadd.s32 4294967295, %s1637_s21   ;;  %s1129_s23 = sadd.s32 4294967294, %s1637_s21   ;;  %s1637_s21 = sphi %s1686_s21, %s1993_s21   ;;  %s1633_s20 = sphi %s1684_s20, %s1992_s20   ;;  %s1629_s19 = sphi %s1682_s19, %s1991_s19   ;;  %s1625_s18 = sphi %s1680_s18, %s1990_s18  }
   0x7   : > { %p42_p0 = scmp.ne.s32.totalorder %s1629_s19, %s1625_s18  ;;  %p1974_p1 = scmp.eq.s32.totalorder %s1701_s22, 0 }
   0x8   : > { %p156_p3 = scmp.eq.s32.totalorder %s1129_s23, 1  ;;  %p1130_p5 = scmp.ge.s32.totalorder %s1637_s21, 1 }
   0x9   : > { %p1710_p4 = por %p1974_p1, %p42_p0  ;;  %p163_p7 = scmp.lt.s32.totalorder %s1637_s21, 3 }
   0xa   : > { %p1715_p6 = por %p156_p3, %p42_p0  ;;  %s1639_s27 = smov [#allocation5]  }
   0xb   : > { %s1977_s24 = scalar_select %p1710_p4, 1, 0 }
   0xc   : > { %s1978_s25 = scalar_select %p1715_p6, 1, 0 }
   0xd   : > { %p1720_p8 = pnand %p1130_p5, %p163_p7  ;;  %s175_s28 = sshll.u32 %s1639_s27, 4  ;;  %s1724_s28 = int_to_ptr.vmem [resolvable:$true] %s175_s28 }
   0xe   : > { %s1640_s30 = smov [#allocation7]   ;;  %s1481_s9 = scalar_lea.hbm %s1969_s1, 3072 }
   0xf   : > { %p1419_p9 = pneg %p1720_p8  ;;  %s191_s6 = sshll.u32 %s1640_s30, 4  ;;  %s1735_s6 = int_to_ptr.vmem [resolvable:$true] %s191_s6 }
  0x10   : > { %p1482_p12 = scmp.ne.s32.totalorder %s1969_s1, %s1481_s9  ;;  %p1488_p5 = scmp.lt.u32.totalorder %s1481_s9, %s1969_s1 }
  0x11   : > { %p1731_p11 = pnand %p1419_p9, %p1974_p1 }
  0x13   : > { %p1483_p13 = pneg %p1731_p11 }
  0x15   : > { %p1484_p0 = pnand %p1483_p13, %p1482_p12 }
  0x17   : > { %p1485_p3 = pneg %p1484_p0 }
  0x19   : > { %p1490_p7 = pnand %p1488_p5, %p1485_p3 }
  0x1b   : > { %1493 = shalt.err (!%p1490_p7)
}
  0x1c   : > { %s1494_s14 = scalar_lea.vmem %s1724_s28, 3072  ;;  %p1502_p2 = scmp.lt.s32.totalorder %s1724_s28, %s1724_s28 }
  0x1d   : > { %p1495_p9 = scmp.ne.s32.totalorder %s1724_s28, %s1494_s14  ;;  %p1503_p12 = scmp.lt.s32.totalorder %s1494_s14, %s1494_s14 }
  0x1f   : > { %p1497_p10 = pnand %p1495_p9, %p1483_p13  ;;  %p1504_p0 = por %p1503_p12, %p1502_p2 }
  0x21   : > { %p1498_p1 = pneg %p1497_p10 }
  0x23   : > { %p1505_p6 = pnand %p1504_p0, %p1498_p1 }
  0x25   : > { %1508 = shalt.err (!%p1505_p6)
}
  0x26   : > { %s1641_s15 = smov 384   ;;  %s1642_s16 = smov 24  }
  0x27   : > { %1422 = dma.hbm_to_vmem [thread:$0]  (!%p1731_p11), %s1969_s1, 3072, %s1724_s28, [#allocation6], %s1641_s15, %s1641_s15, %s1642_s16  }
  0x28   : > { %s1509_s7 = scalar_lea.hbm %s1971_s3, 6144 }
  0x29   : > { %p1510_p2 = scmp.ne.s32.totalorder %s1971_s3, %s1509_s7  ;;  %p1516_p10 = scmp.lt.u32.totalorder %s1509_s7, %s1971_s3 }
  0x2b   : > { %p1512_p1 = pnand %p1510_p2, %p1483_p13 }
  0x2d   : > { %p1513_p6 = pneg %p1512_p1 }
  0x2f   : > { %p1518_p3 = pnand %p1516_p10, %p1513_p6 }
  0x31   : > { %1521 = shalt.err (!%p1518_p3)
}
  0x32   : > { %s1522_s28 = scalar_lea.vmem %s1735_s6, 6144  ;;  %p1530_p12 = scmp.lt.s32.totalorder %s1735_s6, %s1735_s6 }
  0x33   : > { %p1523_p5 = scmp.ne.s32.totalorder %s1735_s6, %s1522_s28  ;;  %p1531_p0 = scmp.lt.s32.totalorder %s1522_s28, %s1522_s28 }
  0x35   : > { %p1525_p7 = pnand %p1523_p5, %p1483_p13  ;;  %p1532_p2 = por %p1531_p0, %p1530_p12 }
  0x37   : > { %p1526_p9 = pneg %p1525_p7 }
  0x39   : > { %p1533_p1 = pnand %p1532_p2, %p1526_p9 }
  0x3b   : > { %1536 = shalt.err (!%p1533_p1)
}
  0x3c   : > { %1425 = dma.hbm_to_vmem [thread:$0]  (!%p1731_p11), %s1971_s3, 6144, %s1735_s6, [#allocation6], %s1641_s15, %s1641_s15, %s1642_s16  }
  0x3d   : > { %s1790_s14 = sadd.s32 1, %s1637_s21   ;;  %s29_s29 = sadd.s32 1, %s1633_s20 }
  0x3e   : > { %s26_s17 = ssub.s32 %s1637_s21, %s1790_s14  ;;  %p36_p13 = scmp.ne.s32.totalorder %s1633_s20, %s1629_s19 }
  0x3f   : > { %p27_p6 = scmp.eq.s32.totalorder %s26_s17, 0  ;;  %p37_p10 = scmp.eq.s32.totalorder %s1637_s21, 0 }
  0x40   : > { %p1981_p3 = scmp.eq.s32.totalorder %s1701_s22, 1  ;;  %p1436_p7 = scmp.lt.s32.totalorder %s1637_s21, 2 }
  0x41   : > { %s1806_s27 = scalar_select %p27_p6, %s1633_s20, %s29_s29  }
  0x42   : > { %p1800_p5 = por %p1981_p3, %p36_p13  ;;  %p38_p9 = por %p37_p10, %p36_p13 }
  0x43   : > { %s208_s30 = sand.u32 1, %s1633_s20   ;;  %s1167_s6 = sshll.u32 %s1637_s21, 8 }
  0x44   : > { %s1982_s23 = scalar_select %p1800_p5, 1, 0 }
  0x45   : > { %s1134_s7 = sshll.u32 %s208_s30, 4  ;;  %s1813_s8 = scalar_lea.hbm %s1968_s0, %s1167_s6 }
  0x46   : > { %s212_s9 = scalar_lea.vmem [#allocation2], %s1134_s7  ;;  %p1817_p11 = pnand %p1436_p7, %p38_p9 }
  0x47   : > { %s219_s10 = sshll.u32 %s212_s9, 4  ;;  %s1821_s28 = scalar_lea.sflag [#allocation3], %s208_s30  ;;  %s1815_s10 = int_to_ptr.vmem [resolvable:$true] %s219_s10 }
  0x48   : > { %s1537_s12 = scalar_lea.hbm %s1813_s8, 256  ;;  %p1539_p0 = pneg %p1817_p11 }
  0x49   : > { %p1538_p12 = scmp.ne.s32.totalorder %s1813_s8, %s1537_s12  ;;  %s1542_s17 = scalar_lea.hbm %s1968_s0, 512 }
  0x4a   : > { %p1543_p13 = scmp.lt.u32.totalorder %s1813_s8, %s1968_s0  ;;  %p1544_p6 = scmp.lt.u32.totalorder %s1542_s17, %s1537_s12 }
  0x4b   : > { %p1540_p2 = pnand %p1539_p0, %p1538_p12  ;;  %p1546_p3 = scmp.lt.u32.totalorder %s1537_s12, %s1813_s8 }
  0x4c   : > { %p1545_p10 = por %p1544_p6, %p1543_p13 }
  0x4d   : > { %p1541_p1 = pneg %p1540_p2 }
  0x4e   : > { %p1547_p7 = por %p1546_p3, %p1545_p10 }
  0x50   : > { %p1548_p9 = pnand %p1547_p7, %p1541_p1 }
  0x52   : > { %1551 = shalt.err (!%p1548_p9)
}
  0x53   : > { %s1552_s30 = scalar_lea.vmem %s1815_s10, 256  ;;  %s1643_s15 = smov [#allocation2]  }
  0x54   : > { %p1553_p12 = scmp.ne.s32.totalorder %s1815_s10, %s1552_s30  ;;  %s1557_s16 = sshll.u32 %s1643_s15, 4  ;;  %s1558_s16 = int_to_ptr.vmem [resolvable:$false] %s1557_s16 }
  0x55   : > { %s1559_s9 = scalar_lea.vmem %s1558_s16, 512  ;;  %p1560_p4 = scmp.lt.s32.totalorder %s1815_s10, %s1558_s16 }
  0x56   : > { %p1555_p2 = pnand %p1553_p12, %p1539_p0  ;;  %p1561_p13 = scmp.lt.s32.totalorder %s1559_s9, %s1552_s30 }
  0x58   : > { %p1556_p5 = pneg %p1555_p2  ;;  %p1562_p6 = por %p1561_p13, %p1560_p4 }
  0x5a   : > { %p1563_p10 = pnand %p1562_p6, %p1556_p5 }
  0x5c   : > { %1566 = shalt.err (!%p1563_p10)
}
  0x5d   : > { %s1644_s12 = smov 128   ;;  %s1645_s13 = smov 8  }
  0x5e   : > { %1429 = dma.hbm_to_vmem [thread:$0]  (!%p1817_p11), %s1813_s8, 256, %s1815_s10, %s1821_s28, %s1644_s12, %s1644_s12, %s1645_s13  }
  0x5f   : > { %231 = sbr.rel (%p1720_p8) target bundleno = 1027 (0x403), region = 40  ;;  %s1852_s29 = sand.u32 (!%p1720_p8), 1, %s1629_s19  }
  0x60   : > { %s1138_s17 = sshll.u32 (!%p1720_p8), %s1852_s29, 4  ;;  %s234_s7 = scalar_lea.sflag (!%p1720_p8), [#allocation3], %s1852_s29 }
  0x61   : > { %s1858_s6 = scalar_lea.vmem (!%p1720_p8), [#allocation2], %s1138_s17  ;;  %p1984_p4 = scmp.ne.s32.totalorder (!%p1720_p8), %s1977_s24, 0 }
  0x66   : > { %1612 = dma.done.wait (%p1984_p4), %s234_s7, 256  }
  0x67   : > { %1614 = vsyncadd (%p1984_p4), %s234_s7, 4294967040  ;;  %p1985_p5 = scmp.eq.s32.totalorder %s1701_s22, 0 }
  0x69   : > { %1616 = dma.done.wait (%p1985_p5), [#allocation6], 9216   ;;  %p1986_p8 = pmov %p1985_p5 }
  0x6a   : > { %v1646_v0 = vmov 0.0   ;;  %v296_v1 = vld [vmem:[#allocation5 + $0x8] sm:$0xff]  ;;  %v299_v2 = vld [vmem:[#allocation5 + $0x20] sm:$0xff]  ;;  %v297_v3 = vld [vmem:[#allocation5 + $0x10] sm:$0xff]  ;;  %vm319_vm0 = vcmask 523264   ;;  %v272_v39 = vlaneseq  ;;  %vm478_vm2 = vcmask 130048  }
  0x6b   : > { %1618 = vsyncadd (%p1986_p8), [#allocation6], 4294958080  ;;  %390 = vmatprep.mubr.f32.mxu0 %v1646_v0  ;;  %v1295_v4 = vpack.c.bf16 %v299_v2, %v296_v1  ;;  %v300_v5 = vld [vmem:[#allocation5 + $0x28] sm:$0xff]  ;;  %v295_v6 = vld [vmem:[#allocation5] sm:$0xff]  ;;  %s271_s11 = scalar_lea.vmem [#allocation8], %s1138_s17  ;;  %s1168_s30 = sshll.u32 %s1701_s22, 8 }
  0x6c   : > { %v298_v7 = vld [vmem:[#allocation5 + $0x18] sm:$0xff]  ;;  %v1311_v8 = vpack.c.bf16 %v300_v5, %v297_v3  ;;  %v305_v11 = vld [vmem:[#allocation5 + $0x50] sm:$0xff]  ;;  %v303_v12 = vld [vmem:[#allocation5 + $0x40] sm:$0xff]  ;;  %v273_v40 = vshrl.u32 %v272_v39, 7  ;;  %v276_v42 = vand.u32 127, %v272_v39  ;;  %s1037_s28 = sshll.u32 %s271_s11, 4  ;;  %s1924_s9 = scalar_lea.hbm %s1973_s5, %s1168_s30  ;;  %s1919_s28 = int_to_ptr.vmem [resolvable:$true] %s1037_s28 }
  0x6d   : > { %v1297_v9 = vpack.c.bf16 %v298_v7, %v295_v6  ;;  %v302_v10 = vld [vmem:[#allocation5 + $0x38] sm:$0xff]  ;;  %1296 = vmatprep.subr.bf16.mxu0 %v1295_v4  ;;  %v301_v15 = vld [vmem:[#allocation5 + $0x30] sm:$0xff]  ;;  %v304_v16 = vld [vmem:[#allocation5 + $0x48] sm:$0xff]  ;;  %s1024_s12 = scalar_lea.sflag [#allocation4], %s1852_s29  ;;  %s1567_s13 = scalar_lea.vmem %s1919_s28, 256 }
  0x6e   : > { %v1299_v13 = vpack.c.bf16 %v305_v11, %v302_v10  ;;  %v306_v14 = vld [vmem:[#allocation5 + $0x58] sm:$0xff]  ;;  %1312 = vmatprep.subr.bf16.mxu1 %v1311_v8  ;;  %v1301_v18 = vpack.c.bf16 %v304_v16, %v301_v15  ;;  %v308_v19 = vld [vmem:[#allocation5 + $0x68] sm:$0xff]  ;;  %v311_v20 = vld [vmem:[#allocation5 + $0x80] sm:$0xff]  ;;  %v274_v41 = vadd.s32 8, %v273_v40  ;;  %v1142_v43 = vadd.s32 4294967295, %v273_v40  ;;  %p1568_p11 = scmp.ne.s32.totalorder %s1919_s28, %s1567_s13  ;;  %p1987_p0 = scmp.ne.s32.totalorder %s1982_s23, 0 }
  0x6f   : > { %1298 = vmatpush1.bf16.msra.mxu0 %v1297_v9  ;;  %v1315_v17 = vpack.c.bf16 %v306_v14, %v303_v12  ;;  %v309_v21 = vld [vmem:[#allocation5 + $0x70] sm:$0xff]  ;;  %1314 = vmatpush3.bf16.msra.mxu1 %v1311_v8  ;;  %v1303_v22 = vpack.c.bf16 %v311_v20, %v308_v19  ;;  %v312_v23 = vld [vmem:[#allocation5 + $0x88] sm:$0xff]  ;;  %v307_v24 = vld [vmem:[#allocation5 + $0x60] sm:$0xff]  ;;  %v285_v45 = vadd.s32 1, %v273_v40  ;;  %s1647_s22 = smov [#allocation8]  }
  0x70   : > { %1300 = vmatprep.subr.bf16.mxu0 %v1299_v13  ;;  %v310_v25 = vld [vmem:[#allocation5 + $0x78] sm:$0xff]  ;;  %v1319_v26 = vpack.c.bf16 %v312_v23, %v309_v21  ;;  %v317_v28 = vld [vmem:[#allocation5 + $0xb0] sm:$0xff]  ;;  %v315_v29 = vld [vmem:[#allocation5 + $0xa0] sm:$0xff]  ;;  %v1143_v44 = vadd.s32 4294967295, %v274_v41  ;;  %vm279_vm1 = vcmp.eq.s32.totalorder %v276_v42, %v1142_v43  ;;  %v286_v46 = vadd.s32 1, %v274_v41  ;;  %p1569_p1 = pnand %p1568_p11, %p1987_p0  ;;  %s1571_s17 = sshll.u32 %s1647_s22, 4  ;;  %s1572_s17 = int_to_ptr.vmem [resolvable:$false] %s1571_s17 }
  0x71   : > { %1316 = vmatprep.subr.bf16.mxu1 %v1315_v17  ;;  %v314_v27 = vld [vmem:[#allocation5 + $0x98] sm:$0xff]  ;;  %v1305_v31 = vpack.c.bf16 %v310_v25, %v307_v24  ;;  %v313_v33 = vld [vmem:[#allocation5 + $0x90] sm:$0xff]  ;;  %v316_v34 = vld [vmem:[#allocation5 + $0xa8] sm:$0xff]  ;;  %v1873_v47 = vsel %vm279_vm1, 1.0, %v1646_v0  ;;  %vm287_vm4 = vcmp.eq.s32.totalorder %v276_v42, %v285_v45  ;;  %s1573_s7 = scalar_lea.vmem %s1572_s17, 512  ;;  %p1574_p7 = scmp.lt.s32.totalorder %s1919_s28, %s1572_s17 }
  0x72   : > { %v318_v30 = vld [vmem:[#allocation5 + $0xb8] sm:$0xff]  ;;  %v1307_v32 = vpack.c.bf16 %v317_v28, %v314_v27  ;;  %v293_v35 = vld [vmem:[%s1858_s6] sm:$0xff]  ;;  %v1309_v37 = vpack.c.bf16 %v316_v34, %v313_v33  ;;  %vm280_vm3 = vcmp.eq.s32.totalorder %v276_v42, %v1143_v44  ;;  %v1878_v48 = vsel %vm287_vm4, 1.0, %v1646_v0  ;;  %v661_v51 = vld [vmem:[#allocation7 + $0x28] sm:$0xff]  ;;  %p1570_p3 = pneg %p1569_p1  ;;  %p1575_p9 = scmp.lt.s32.totalorder %s1573_s7, %s1567_s13 }
  0x73   : > { %1302 = vmatpush1.bf16.msra.mxu0 %v1301_v18  ;;  %1318 = vmatpush3.bf16.msra.mxu1 %v1315_v17  ;;  %v1323_v36 = vpack.c.bf16 %v318_v30, %v315_v29  ;;  %v294_v38 = vld [vmem:[%s1858_s6 + $0x8] sm:$0xff]  ;;  %vm288_vm5 = vcmp.eq.s32.totalorder %v276_v42, %v286_v46  ;;  %v658_v50 = vld [vmem:[#allocation7 + $0x10] sm:$0xff]  ;;  %v660_v56 = vld [vmem:[#allocation7 + $0x20] sm:$0xff]  ;;  %v1892_v8 = vsel %vm280_vm3, 1.0, %v1646_v0 }
  0x74   : > { %1304 = vmatprep.subr.bf16.mxu0 %v1303_v22  ;;  %1320 = vmatprep.subr.bf16.mxu1 %v1319_v26  ;;  %v657_v55 = vld [vmem:[#allocation7 + $0x8] sm:$0xff]  ;;  %v1367_v58 = vpack.c.bf16 %v661_v51, %v658_v50  ;;  %v664_v60 = vld [vmem:[#allocation7 + $0x40] sm:$0xff]  ;;  %v667_v61 = vld [vmem:[#allocation7 + $0x58] sm:$0xff]  ;;  %v1888_v4 = vsel %vm288_vm5, 1.0, %v1646_v0  ;;  %p1576_p12 = por %p1575_p9, %p1574_p7 }
  0x75   : > { %1229 = vmatprep.mubr.msk.f32.mxu1 %vm319_vm0, %v293_v35  ;;  %v1335_v1 = vpack.c.bf16 %v660_v56, %v657_v55  ;;  %v656_v2 = vld [vmem:[#allocation7] sm:$0xff]  ;;  %v659_v3 = vld [vmem:[#allocation7 + $0x18] sm:$0xff]  ;;  %v666_v6 = vld [vmem:[#allocation7 + $0x50] sm:$0xff]  ;;  %v1371_v7 = vpack.c.bf16 %v667_v61, %v664_v60 }
  0x76   : > { %v663_v5 = vld [vmem:[#allocation7 + $0x38] sm:$0xff]  ;;  %v1337_v9 = vpack.c.bf16 %v659_v3, %v656_v2  ;;  %v670_v10 = vld [vmem:[#allocation7 + $0x70] sm:$0xff]  ;;  %v673_v11 = vld [vmem:[#allocation7 + $0x88] sm:$0xff]  ;;  %p1577_p2 = pnand %p1576_p12, %p1570_p3 }
  0x77   : > { %1306 = vmatpush1.bf16.msra.mxu0 %v1305_v31  ;;  %1322 = vmatpush3.bf16.msra.mxu1 %v1319_v26  ;;  %v1339_v12 = vpack.c.bf16 %v666_v6, %v663_v5  ;;  %v662_v13 = vld [vmem:[#allocation7 + $0x30] sm:$0xff]  ;;  %v665_v14 = vld [vmem:[#allocation7 + $0x48] sm:$0xff]  ;;  %v672_v16 = vld [vmem:[#allocation7 + $0x80] sm:$0xff]  ;;  %v1375_v17 = vpack.c.bf16 %v673_v11, %v670_v10 }
  0x78   : > { %1308 = vmatprep.subr.bf16.mxu0 %v1307_v32  ;;  %1324 = vmatprep.subr.bf16.mxu1 %v1323_v36  ;;  %v669_v15 = vld [vmem:[#allocation7 + $0x68] sm:$0xff]  ;;  %v1341_v18 = vpack.c.bf16 %v665_v14, %v662_v13  ;;  %v676_v19 = vld [vmem:[#allocation7 + $0xa0] sm:$0xff]  ;;  %v679_v20 = vld [vmem:[#allocation7 + $0xb8] sm:$0xff] }
  0x79   : > { %v1343_v21 = vpack.c.bf16 %v672_v16, %v669_v15  ;;  %v668_v22 = vld [vmem:[#allocation7 + $0x60] sm:$0xff]  ;;  %v671_v23 = vld [vmem:[#allocation7 + $0x78] sm:$0xff]  ;;  %v678_v25 = vld [vmem:[#allocation7 + $0xb0] sm:$0xff]  ;;  %v1379_v26 = vpack.c.bf16 %v679_v20, %v676_v19 }
  0x7a   : > { %v675_v24 = vld [vmem:[#allocation7 + $0x98] sm:$0xff]  ;;  %v1345_v27 = vpack.c.bf16 %v671_v23, %v668_v22  ;;  %v682_v28 = vld [vmem:[#allocation7 + $0xd0] sm:$0xff]  ;;  %v685_v29 = vld [vmem:[#allocation7 + $0xe8] sm:$0xff] }
  0x7b   : > { %1310 = vmatpush1.bf16.msra.mxu0 %v1309_v37  ;;  %1326 = vmatpush3.bf16.msra.mxu1 %v1323_v36  ;;  %v1347_v30 = vpack.c.bf16 %v678_v25, %v675_v24  ;;  %v674_v31 = vld [vmem:[#allocation7 + $0x90] sm:$0xff]  ;;  %v677_v32 = vld [vmem:[#allocation7 + $0xa8] sm:$0xff]  ;;  %v684_v34 = vld [vmem:[#allocation7 + $0xe0] sm:$0xff] }
  0x7c   : > { %v681_v33 = vld [vmem:[#allocation7 + $0xc8] sm:$0xff]  ;;  %v1349_v36 = vpack.c.bf16 %v677_v32, %v674_v31  ;;  %v688_v37 = vld [vmem:[#allocation7 + $0x100] sm:$0xff]  ;;  %v683_v41 = vld [vmem:[#allocation7 + $0xd8] sm:$0xff] }
  0x7d   : > { %v1351_v39 = vpack.c.bf16 %v684_v34, %v681_v33  ;;  %v680_v40 = vld [vmem:[#allocation7 + $0xc0] sm:$0xff]  ;;  %v687_v42 = vld [vmem:[#allocation7 + $0xf8] sm:$0xff]  ;;  %v690_v43 = vld [vmem:[#allocation7 + $0x110] sm:$0xff] }
  0x7e   : > { %1148 = vmatmul.mubr.msk.f32.vlgmr.msra.gmra.mrb[0].mxu0 %vm319_vm0, %v293_v35  ;;  %1230 = vmatmul.mubr.msk.f32.vlgmr.msra.gmra.mrb[0].mxu1 %vm319_vm0, %v294_v38  ;;  %v1383_v35 = vpack.c.bf16 %v685_v29, %v682_v28  ;;  %v1353_v45 = vpack.c.bf16 %v683_v41, %v680_v40  ;;  %v1355_v46 = vpack.c.bf16 %v690_v43, %v687_v42  ;;  %v689_v50 = vld [vmem:[#allocation7 + $0x108] sm:$0xff]  ;;  %v692_v56 = vld [vmem:[#allocation7 + $0x120] sm:$0xff]  ;;  %v698_v3 = vld [vmem:[#allocation7 + $0x150] sm:$0xff] }
  0x7f   : > { %396 = vmatprep.mubr.f32.mxu0 %v1646_v0  ;;  %1236 = vmatprep.mubr.msk.f32.mxu1 %vm478_vm2, %v1873_v47  ;;  %v697_v60 = vld [vmem:[#allocation7 + $0x148] sm:$0xff]  ;;  %v700_v6 = vld [vmem:[#allocation7 + $0x160] sm:$0xff] }
  0x80   : > { %v701_v5 = vld [vmem:[#allocation7 + $0x168] sm:$0xff]  ;;  %v1161_v33 = vld [vmem:[%s1972_s4] ss:$0 sm:$0xff] }
  0x82   : > { %1149 = vmatmul.mubr.msk.f32.gmra.mrb[2].mxu0 %vm319_vm0, %v294_v38  ;;  %v691_v38 = vld [vmem:[#allocation7 + $0x118] sm:$0xff] }
  0x83   : > { %1243 = vmatprep.mubr.msk.f32.mxu0 %vm478_vm2, %v1878_v48  ;;  %v1387_v44 = vpack.c.bf16 %v691_v38, %v688_v37 }
 0x151   : > { %v392_v49 = vpop.f32.mrb[0].mxu0  ;;  %v1231_v52 = vpop.f32.mrb[0].mxu1 }
 0x152   : > { %v1882_v53 = vpop.f32.mrb[1].mxu0  ;;  %v469_v54 = vpop.f32.mrb[1].mxu1 }
 0x153   : > { %v1331_v57 = vpack.c.bf16 %v1231_v52, %v469_v54  ;;  %v693_v52 = vld [vmem:[#allocation7 + $0x128] sm:$0xff]  ;;  %v696_v54 = vld [vmem:[#allocation7 + $0x140] sm:$0xff] }
 0x154   : > { %v1359_v55 = vpack.c.bf16 %v696_v54, %v693_v52 }
 0x155   : > { %v398_v59 = vpop.f32.mrb[2].mxu0  ;;  %1332 = vmatprep.subr.bf16.mxu0 %v1331_v57 }
 0x156   : > { %v1327_v62 = vpack.c.bf16 %v398_v59, %v392_v49  ;;  %v1884_v63 = vpop.f32.mrb[3].mxu0  ;;  %1334 = vmatpush3.bf16.msra.mxu0 %v1331_v57  ;;  %v686_v49 = vld [vmem:[#allocation7 + $0xf0] sm:$0xff]  ;;  %v695_v57 = vld [vmem:[#allocation7 + $0x138] sm:$0xff] }
 0x157   : > { %1368 = vmatprep.subr.bf16.mxu0 %v1367_v58  ;;  %v1357_v51 = vpack.c.bf16 %v689_v50, %v686_v49  ;;  %v1361_v59 = vpack.c.bf16 %v695_v57, %v692_v56 }
 0x158   : > { %1328 = vmatprep.subr.bf16.mxu1 %v1327_v62 }
 0x159   : > { %1330 = vmatpush3.bf16.msra.mxu1 %v1327_v62  ;;  %1244 = vmatmul.mubr.msk.f32.vlgmr.msra.gmra.mrb[4].mxu0 %vm478_vm2, %v1888_v4  ;;  %v699_v62 = vld [vmem:[#allocation7 + $0x158] sm:$0xff] }
 0x15a   : > { %1336 = vmatprep.subr.bf16.mxu1 %v1335_v1  ;;  %1370 = vmatpush3.bf16.msra.mxu0 %v1367_v58  ;;  %v694_v58 = vld [vmem:[#allocation7 + $0x130] sm:$0xff] }
 0x15b   : > { %1372 = vmatprep.subr.bf16.mxu0 %v1371_v7  ;;  %v1391_v61 = vpack.c.bf16 %v697_v60, %v694_v58  ;;  %v702_v1 = vld [vmem:[#allocation7 + $0x170] sm:$0xff] }
 0x15c   : > { %1237 = vmatmul.mubr.msk.f32.vlgmr.msra.gmra.mrb[2].mxu1 %vm478_vm2, %v1892_v8  ;;  %v1363_v2 = vpack.c.bf16 %v702_v1, %v699_v62 }
 0x15d   : > { %1338 = vmatpush1.bf16.msra.mxu1 %v1337_v9  ;;  %768 = vmatprep.mubr.f32.mxu1 %v1646_v0  ;;  %v703_v9 = vld [vmem:[#allocation7 + $0x178] sm:$0xff] }
 0x15e   : > { %1340 = vmatprep.subr.bf16.mxu1 %v1339_v12  ;;  %1374 = vmatpush3.bf16.msra.mxu0 %v1371_v7  ;;  %v1365_v7 = vpack.c.bf16 %v701_v5, %v698_v3  ;;  %v1395_v10 = vpack.c.bf16 %v703_v9, %v700_v6 }
 0x15f   : > { %1376 = vmatprep.subr.bf16.mxu0 %v1375_v17 }
 0x161   : > { %1342 = vmatpush1.bf16.msra.mxu1 %v1341_v18 }
 0x162   : > { %1344 = vmatprep.subr.bf16.mxu1 %v1343_v21  ;;  %1378 = vmatpush3.bf16.msra.mxu0 %v1375_v17  ;;  %v1156_v17 = vld [vmem:[%s1970_s2] ss:$0 sm:$0xff] }
 0x163   : > { %1380 = vmatprep.subr.bf16.mxu0 %v1379_v26 }
 0x165   : > { %1346 = vmatpush1.bf16.msra.mxu1 %v1345_v27 }
 0x166   : > { %1348 = vmatprep.subr.bf16.mxu1 %v1347_v30  ;;  %1382 = vmatpush3.bf16.msra.mxu0 %v1379_v26 }
 0x167   : > { %1384 = vmatprep.subr.bf16.mxu0 %v1383_v35 }
 0x169   : > { %1350 = vmatpush1.bf16.msra.mxu1 %v1349_v36 }
 0x16a   : > { %1352 = vmatprep.subr.bf16.mxu1 %v1351_v39  ;;  %1386 = vmatpush3.bf16.msra.mxu0 %v1383_v35 }
 0x16b   : > { %1388 = vmatprep.subr.bf16.mxu0 %v1387_v44 }
 0x16d   : > { %1354 = vmatpush1.bf16.msra.mxu1 %v1353_v45 }
 0x16e   : > { %1356 = vmatprep.subr.bf16.mxu1 %v1355_v46  ;;  %1390 = vmatpush3.bf16.msra.mxu0 %v1387_v44 }
 0x16f   : > { %1392 = vmatprep.subr.bf16.mxu0 %v1391_v61 }
 0x171   : > { %1358 = vmatpush1.bf16.msra.mxu1 %v1357_v51 }
 0x172   : > { %1360 = vmatprep.subr.bf16.mxu1 %v1359_v55  ;;  %1394 = vmatpush3.bf16.msra.mxu0 %v1391_v61 }
 0x173   : > { %1396 = vmatprep.subr.bf16.mxu0 %v1395_v10 }
 0x175   : > { %1362 = vmatpush1.bf16.msra.mxu1 %v1361_v59 }
 0x176   : > { %1364 = vmatprep.subr.bf16.mxu1 %v1363_v2  ;;  %1398 = vmatpush3.bf16.msra.mxu0 %v1395_v10 }
 0x179   : > { %1366 = vmatpush1.bf16.msra.mxu1 %v1365_v7 }
 0x22c   : > { %v1245_v11 = vpop.f32.mrb[4].mxu0 }
 0x22d   : > { %v634_v12 = vpop.f32.mrb[5].mxu0 }
 0x22f   : > { %v1238_v13 = vpop.f32.mrb[2].mxu1 }
 0x230   : > { %v561_v14 = vadd.f32 %v1238_v13, %v1884_v63  ;;  %v551_v15 = vpop.f32.mrb[3].mxu1 }
 0x231   : > { %v560_v16 = vadd.f32 %v551_v15, %v1882_v53 }
 0x232   : > { %v644_v18 = vadd.f32 %v1245_v11, %v561_v14 }
 0x233   : > { %v643_v19 = vadd.f32 %v634_v12, %v560_v16 }
 0x234   : > { %v653_v20 = vadd.f32 %v1156_v17, %v644_v18 }
 0x235   : > { %v652_v21 = vadd.f32 %v1156_v17, %v643_v19 }
 0x236   : > { %v655_v23 = vmax.f32 %v653_v20, 0.0 }
 0x237   : > { %v654_v22 = vmax.f32 %v652_v21, 0.0 }
 0x239   : > { %769 = vmatmul.mubr.f32.vlgmr.msra.gmra.mrb[4].mxu1 %v654_v22  ;;  %1278 = vmatprep.mubr.f32.mxu0 %v654_v22 }
 0x23a   : > { %1279 = vmatmul.mubr.f32.vlgmr.msra.gmra.mrb[6].mxu0 %v655_v23  ;;  %774 = vmatprep.mubr.f32.mxu1 %v1646_v0 }
 0x23b   : > { %1285 = vmatprep.mubr.msk.f32.mxu0 %vm478_vm2, %v1873_v47 }
 0x23d   : > { %775 = vmatmul.mubr.f32.gmra.mrb[6].mxu1 %v655_v23 }
 0x23e   : > { %1292 = vmatprep.mubr.msk.f32.mxu1 %vm478_vm2, %v1878_v48 }
 0x30c   : > { %v770_v53 = vpop.f32.mrb[4].mxu1 }
 0x30d   : > { %v772_v63 = vpop.f32.mrb[5].mxu1  ;;  %v1280_v24 = vpop.f32.mrb[6].mxu0 }
 0x30e   : > { %v847_v25 = vpop.f32.mrb[7].mxu0 }
 0x30f   : > { %v1403_v26 = vpack.c.bf16 %v1280_v24, %v847_v25 }
 0x310   : > { %v776_v27 = vpop.f32.mrb[6].mxu1 }
 0x311   : > { %v1399_v28 = vpack.c.bf16 %v776_v27, %v770_v53  ;;  %v778_v29 = vpop.f32.mrb[7].mxu1  ;;  %1404 = vmatprep.subr.bf16.mxu1 %v1403_v26 }
 0x312   : > { %1406 = vmatpush3.bf16.msra.mxu1 %v1403_v26 }
 0x313   : > { %1400 = vmatprep.subr.bf16.mxu0 %v1399_v28 }
 0x314   : > { %1402 = vmatpush3.bf16.msra.mxu0 %v1399_v28 }
 0x315   : > { %1293 = vmatmul.mubr.msk.f32.vlgmr.msra.gmra.mrb[8].mxu1 %vm478_vm2, %v1888_v4 }
 0x317   : > { %1286 = vmatmul.mubr.msk.f32.vlgmr.msra.gmra.mrb[8].mxu0 %vm478_vm2, %v1892_v8 }
 0x3e8   : > { %v1294_v0 = vpop.f32.mrb[8].mxu1 }
 0x3e9   : > { %v999_v47 = vpop.f32.mrb[9].mxu1 }
 0x3ea   : > { %v1287_v48 = vpop.f32.mrb[8].mxu0 }
 0x3eb   : > { %v932_v30 = vadd.f32 %v1287_v48, %v778_v29  ;;  %v922_v31 = vpop.f32.mrb[9].mxu0 }
 0x3ec   : > { %v931_v32 = vadd.f32 %v922_v31, %v772_v63 }
 0x3ed   : > { %v1009_v34 = vadd.f32 %v1294_v0, %v932_v30 }
 0x3ee   : > { %v1008_v4 = vadd.f32 %v999_v47, %v931_v32 }
 0x3ef   : > { %v1018_v35 = vadd.f32 %v1161_v33, %v1009_v34 }
 0x3f0   : > { %v1017_v8 = vadd.f32 %v1161_v33, %v1008_v4 }
 0x3f1   : > { %v1020_v36 = vmax.f32 %v1018_v35, 0.0 }
 0x3f2   : > { %v1019_v37 = vmax.f32 %v1017_v8, 0.0 }
 0x3f3   : > { %1022 = vst [vmem:[%s271_s11 + $0x8] sm:$0xff] %v1020_v36 }
 0x3f4   : > { %1021 = vst [vmem:[%s271_s11] sm:$0xff] %v1019_v37 }
 0x3f5   : > { %1580 = shalt.err (!%p1577_p2)
}
 0x3f6   : > { %s1581_s6 = scalar_lea.hbm %s1924_s9, 256  ;;  %s1585_s8 = scalar_lea.hbm %s1973_s5, 512 }
 0x3f7   : > { %p1582_p13 = scmp.ne.s32.totalorder %s1924_s9, %s1581_s6  ;;  %p1586_p4 = scmp.lt.u32.totalorder %s1924_s9, %s1973_s5 }
 0x3f8   : > { %p1587_p5 = scmp.lt.u32.totalorder %s1585_s8, %s1581_s6  ;;  %p1589_p11 = scmp.lt.u32.totalorder %s1581_s6, %s1924_s9 }
 0x3f9   : > { %p1583_p6 = pnand %p1582_p13, %p1987_p0 }
 0x3fa   : > { %p1588_p8 = por %p1587_p5, %p1586_p4 }
 0x3fb   : > { %p1584_p10 = pneg %p1583_p6 }
 0x3fc   : > { %p1590_p1 = por %p1589_p11, %p1588_p8 }
 0x3fe   : > { %p1591_p3 = pnand %p1590_p1, %p1584_p10 }
 0x400   : > { %1594 = shalt.err (!%p1591_p3)
}
 0x401   : > { %s1648_s30 = smov 128   ;;  %s1649_s15 = smov 8  }
 0x402   : > { %1417 = dma.vmem_to_hbm [thread:$0]  (%p1987_p0), %s1919_s28, 256, %s1924_s9, %s1024_s12, %s1648_s30, %s1648_s30, %s1649_s15  }
 0x403 PF: > { %s1052_s16 = sand.u32 1, %s1625_s18   ;;  %p1988_p7 = scmp.ne.s32.totalorder %s1978_s25, 0 }
 0x404   : > { %p1989_p9 = scmp.ge.s32.totalorder %s1637_s21, 2  ;;  %s1053_s13 = scalar_lea.sflag [#allocation4], %s1052_s16 }
 0x406   : > { %p1431_p12 = pnand %p1989_p9, %p1988_p7 }
 0x408   : > { %1620 = dma.done.wait (!%p1431_p12), %s1053_s13, 256  }
 0x409   : > { %1622 = vsyncadd (!%p1431_p12), %s1053_s13, 4294967040  ;;  %p19_p2 = scmp.ge.s32.totalorder %s1790_s14, 4   ;;  %s1990_s18 = smov %s1629_s19 }
 0x40a   : > { %s1991_s19 = smov %s1633_s20  ;;  %s1992_s20 = smov %s1806_s27 }
 0x40b   : > { %s1993_s21 = smov %s1790_s14  ;;  %21 = sbr.rel (!%p19_p2) target bundleno = 6 (0x6), region = 93 }
 0x412   :  { %1058 = vsyncpa [#allocation3], 1 }
 0x413   :  { %1060 = vsyncpa [#allocation3 + $0x1], 1 }
 0x414   :  { %1061 = vsyncpa [#allocation6], 1 }
 0x415   :  { %1062 = vsyncpa [#allocation4], 1 }
 0x416   :  { %1064 = vsyncpa [#allocation4 + $0x1], 1 }

</bundles_post_ra>
